<compile_context>
chip_gen: v7x
topology: tpu7x:2x2x1
jax: 0.10.0
libtpu: 0.0.40
codegen_flags: <defaults>
</compile_context>

<pallas_src>
import functools
import math

import jax
import jax.numpy as jnp
from jax.experimental import pallas as pl
from jax.experimental.pallas import tpu as pltpu


def _round_up(n, m):
    return ((n + m - 1) // m) * m


def actor_kernel(x_ref, w1_ref, b1_ref, w2_ref, b2_ref, w3_ref, b3_ref,
                 out_ref, *, max_action):
    cdt = w1_ref.dtype  # compute dtype for MXU operands (bf16 on v6e/v7x path)

    x = x_ref[...].astype(cdt)

    # Layer 1: Linear + ReLU (MXU matmul, f32 accumulate; bias add in f32)
    h1 = jnp.dot(x, w1_ref[...], preferred_element_type=jnp.float32) + b1_ref[...]
    h1 = jnp.maximum(h1, 0.0)

    # Layer 2: Linear + ReLU
    h2 = jnp.dot(h1.astype(cdt), w2_ref[...],
                 preferred_element_type=jnp.float32) + b2_ref[...]
    h2 = jnp.maximum(h2, 0.0)

    # Layer 3: Linear + tanh * max_action (lane-padded output columns are zero)
    y = jnp.dot(h2.astype(cdt), w3_ref[...],
                preferred_element_type=jnp.float32) + b3_ref[...]
    out_ref[...] = (max_action * jnp.tanh(y)).astype(out_ref.dtype)


def actor_forward(x, params, max_action, *, block_batch=512):
    """x: [B, state_dim] f32.

    params: dict with W1,W2,W3 ([in, out], any float dtype) and b1,b2,b3 ([1, out], f32).
    Returns [B, action_dim] f32.
    """
    B, state_dim = x.shape
    action_dim = params["W3"].shape[1]

    # --- Lane-dense output: pad action_dim up to a multiple of 128 lanes. ---
    out_pad = _round_up(action_dim, 128)
    w3p = jnp.pad(params["W3"], ((0, 0), (0, out_pad - action_dim)))
    b3p = jnp.pad(params["b3"], ((0, 0), (0, out_pad - action_dim)))

    # --- Batch tile: multiple of 8 sublanes, capped for v7x VMEM headroom. ---
    tb = min(block_batch, _round_up(B, 8))
    tb = _round_up(tb, 8)
    b_pad = _round_up(B, tb)
    xp = jnp.pad(x, ((0, b_pad - B), (0, 0)))

    grid = (b_pad // tb,)

    def resident(shape):
        # Weights/biases: same block every grid step -> stay VMEM-resident.
        return pl.BlockSpec(shape, lambda i: (0, 0))

    kernel = functools.partial(actor_kernel, max_action=float(max_action))
    out = pl.pallas_call(
        kernel,
        out_shape=jax.ShapeDtypeStruct((b_pad, out_pad), jnp.float32),
        grid=grid,
        in_specs=[
            pl.BlockSpec((tb, state_dim), lambda i: (i, 0)),  # x streams over batch
            resident(params["W1"].shape),
            resident(params["b1"].shape),
            resident(params["W2"].shape),
            resident(params["b2"].shape),
            resident(w3p.shape),
            resident(b3p.shape),
        ],
        out_specs=pl.BlockSpec((tb, out_pad), lambda i: (i, 0)),
        compiler_params=pltpu.CompilerParams(
            dimension_semantics=("parallel",),  # 2 TCs on v7x; no-op on v5e/v6e
        ),
    )(xp, params["W1"], params["b1"], params["W2"], params["b2"], w3p, b3p)

    # Free layout plumbing: drop batch + lane padding.
    return out[:B, :action_dim]


def init_actor_params(key, state_dim, action_dim, hidden_layer=(32, 32),
                      weight_dtype=jnp.bfloat16):
    """PyTorch-style Linear init: U(-1/sqrt(fan_in), 1/sqrt(fan_in)).

    Weights stored as [in, out] (so y = x @ W + b), cast to `weight_dtype`;
    biases kept f32.
    """
    dims = [state_dim, hidden_layer[0], hidden_layer[1], action_dim]
    params = {}
    for i in range(3):
        fan_in, fan_out = dims[i], dims[i + 1]
        key, kw, kb = jax.random.split(key, 3)
        bound = 1.0 / math.sqrt(fan_in)
        w = jax.random.uniform(kw, (fan_in, fan_out), jnp.float32, -bound, bound)
        b = jax.random.uniform(kb, (1, fan_out), jnp.float32, -bound, bound)
        params[f"W{i+1}"] = w.astype(weight_dtype)
        params[f"b{i+1}"] = b
    return params


def ref_forward(x, params, max_action):
    """Pure-JAX reference performing the same bf16-weight math as the kernel."""
    cdt = params["W1"].dtype
    h1 = jnp.maximum(
        jnp.dot(x.astype(cdt), params["W1"],
                preferred_element_type=jnp.float32) + params["b1"], 0.0)
    h2 = jnp.maximum(
        jnp.dot(h1.astype(cdt), params["W2"],
                preferred_element_type=jnp.float32) + params["b2"], 0.0)
    y = jnp.dot(h2.astype(cdt), params["W3"],
                preferred_element_type=jnp.float32) + params["b3"]
    return max_action * jnp.tanh(y)


if __name__ == "__main__":
    key = jax.random.PRNGKey(0)
    batch = 2
    state_dim = 16
    action_dim = 8
    hidden = (32, 32)
    max_action = 2.0

    key, kx, kp = jax.random.split(key, 3)
    x = jax.random.normal(kx, (batch, state_dim), jnp.float32)
    params = init_actor_params(kp, state_dim, action_dim, hidden,
                               weight_dtype=jnp.bfloat16)

    out = actor_forward(x, params, max_action)
    out = jax.block_until_ready(out)

    ref = ref_forward(x, params, max_action)
    assert out.shape == (batch, action_dim)
    assert jnp.allclose(out, ref, atol=1e-3, rtol=1e-3), \
        float(jnp.max(jnp.abs(out - ref)))

    print("KERNEL_OK")
</pallas_src>

<mosaic_0001>
module attributes {stable_mosaic.version = 11 : i64} {
  func.func @actor_kernel(%arg0: i32, %arg1: memref<8x16xf32, #tpu.memory_space<vmem>>, %arg2: memref<16x32xbf16, #tpu.memory_space<vmem>>, %arg3: memref<1x32xf32, #tpu.memory_space<vmem>>, %arg4: memref<32x32xbf16, #tpu.memory_space<vmem>>, %arg5: memref<1x32xf32, #tpu.memory_space<vmem>>, %arg6: memref<32x128xbf16, #tpu.memory_space<vmem>>, %arg7: memref<1x128xf32, #tpu.memory_space<vmem>>, %arg8: memref<8x128xf32, #tpu.memory_space<vmem>>) attributes {dimension_semantics = [#tpu.dimension_semantics<parallel>], iteration_bounds = array<i64: 1>, scalar_prefetch = 0 : i64, scratch_operands = 0 : i64, tpu.core_type = #tpu.core_type<tc>, window_params = [{transform_indices = @transform_0, window_bounds = array<i64: 8, 16>}, {pipeline_mode = #tpu.pipeline_mode<synchronous>, transform_indices = @transform_1, window_bounds = array<i64: 16, 32>}, {pipeline_mode = #tpu.pipeline_mode<synchronous>, transform_indices = @transform_2, window_bounds = array<i64: 1, 32>}, {pipeline_mode = #tpu.pipeline_mode<synchronous>, transform_indices = @transform_3, window_bounds = array<i64: 32, 32>}, {pipeline_mode = #tpu.pipeline_mode<synchronous>, transform_indices = @transform_4, window_bounds = array<i64: 1, 32>}, {pipeline_mode = #tpu.pipeline_mode<synchronous>, transform_indices = @transform_5, window_bounds = array<i64: 32, 128>}, {pipeline_mode = #tpu.pipeline_mode<synchronous>, transform_indices = @transform_6, window_bounds = array<i64: 1, 128>}, {transform_indices = @transform_7, window_bounds = array<i64: 8, 128>}]} {
    %c0 = arith.constant 0 : index
    %c0_0 = arith.constant 0 : index
    %0 = vector.load %arg1[%c0, %c0_0] : memref<8x16xf32, #tpu.memory_space<vmem>>, vector<8x16xf32>
    %1 = arith.truncf %0 : vector<8x16xf32> to vector<8x16xbf16>
    %c0_1 = arith.constant 0 : index
    %c0_2 = arith.constant 0 : index
    %2 = vector.load %arg2[%c0_1, %c0_2] : memref<16x32xbf16, #tpu.memory_space<vmem>>, vector<16x32xbf16>
    %cst = arith.constant dense<0.000000e+00> : vector<8x32xf32>
    %3 = tpu.matmul %1, %2, %cst {dimension_numbers = #tpu.dot_dimension_numbers<[1], [0], [0], [1], [0, 0, 1, 1], [], []>} : vector<8x16xbf16>, vector<16x32xbf16>, vector<8x32xf32> -> vector<8x32xf32>
    %c0_3 = arith.constant 0 : index
    %c0_4 = arith.constant 0 : index
    %4 = vector.load %arg3[%c0_3, %c0_4] : memref<1x32xf32, #tpu.memory_space<vmem>>, vector<1x32xf32>
    %5 = vector.broadcast %4 : vector<1x32xf32> to vector<8x32xf32>
    %6 = arith.addf %3, %5 : vector<8x32xf32>
    %cst_5 = arith.constant 0.000000e+00 : f32
    %7 = vector.broadcast %cst_5 : f32 to vector<8x32xf32>
    %8 = arith.maximumf %6, %7 : vector<8x32xf32>
    %9 = arith.truncf %8 : vector<8x32xf32> to vector<8x32xbf16>
    %c0_6 = arith.constant 0 : index
    %c0_7 = arith.constant 0 : index
    %10 = vector.load %arg4[%c0_6, %c0_7] : memref<32x32xbf16, #tpu.memory_space<vmem>>, vector<32x32xbf16>
    %cst_8 = arith.constant dense<0.000000e+00> : vector<8x32xf32>
    %11 = tpu.matmul %9, %10, %cst_8 {dimension_numbers = #tpu.dot_dimension_numbers<[1], [0], [0], [1], [0, 0, 1, 1], [], []>} : vector<8x32xbf16>, vector<32x32xbf16>, vector<8x32xf32> -> vector<8x32xf32>
    %c0_9 = arith.constant 0 : index
    %c0_10 = arith.constant 0 : index
    %12 = vector.load %arg5[%c0_9, %c0_10] : memref<1x32xf32, #tpu.memory_space<vmem>>, vector<1x32xf32>
    %13 = vector.broadcast %12 : vector<1x32xf32> to vector<8x32xf32>
    %14 = arith.addf %11, %13 : vector<8x32xf32>
    %cst_11 = arith.constant 0.000000e+00 : f32
    %15 = vector.broadcast %cst_11 : f32 to vector<8x32xf32>
    %16 = arith.maximumf %14, %15 : vector<8x32xf32>
    %17 = arith.truncf %16 : vector<8x32xf32> to vector<8x32xbf16>
    %c0_12 = arith.constant 0 : index
    %c0_13 = arith.constant 0 : index
    %18 = vector.load %arg6[%c0_12, %c0_13] : memref<32x128xbf16, #tpu.memory_space<vmem>>, vector<32x128xbf16>
    %cst_14 = arith.constant dense<0.000000e+00> : vector<8x128xf32>
    %19 = tpu.matmul %17, %18, %cst_14 {dimension_numbers = #tpu.dot_dimension_numbers<[1], [0], [0], [1], [0, 0, 1, 1], [], []>} : vector<8x32xbf16>, vector<32x128xbf16>, vector<8x128xf32> -> vector<8x128xf32>
    %c0_15 = arith.constant 0 : index
    %c0_16 = arith.constant 0 : index
    %20 = vector.load %arg7[%c0_15, %c0_16] : memref<1x128xf32, #tpu.memory_space<vmem>>, vector<1x128xf32>
    %21 = vector.broadcast %20 : vector<1x128xf32> to vector<8x128xf32>
    %22 = arith.addf %19, %21 : vector<8x128xf32>
    %23 = math.tanh %22 : vector<8x128xf32>
    %cst_17 = arith.constant 2.000000e+00 : f32
    %24 = vector.broadcast %cst_17 : f32 to vector<8x128xf32>
    %25 = arith.mulf %24, %23 : vector<8x128xf32>
    %c0_18 = arith.constant 0 : index
    %c0_19 = arith.constant 0 : index
    %26 = vector.load %arg8[%c0_18, %c0_19] : memref<8x128xf32, #tpu.memory_space<vmem>>, vector<8x128xf32>
    tpu.vector_store %arg8[%c0_18, %c0_19], %25 {strides = array<i32>} : memref<8x128xf32, #tpu.memory_space<vmem>>, vector<8x128xf32>,
    return
  }
  func.func @transform_0(%arg0: i32) -> (i32, i32) {
    %c0_i32 = arith.constant 0 : i32
    %c0_i32_0 = arith.constant 0 : i32
    return %arg0, %c0_i32 : i32, i32
  }
  func.func @transform_1(%arg0: i32) -> (i32, i32) {
    %c0_i32 = arith.constant 0 : i32
    %c0_i32_0 = arith.constant 0 : i32
    %c0_i32_1 = arith.constant 0 : i32
    return %c0_i32, %c0_i32_0 : i32, i32
  }
  func.func @transform_2(%arg0: i32) -> (i32, i32) {
    %c0_i32 = arith.constant 0 : i32
    %c0_i32_0 = arith.constant 0 : i32
    %c0_i32_1 = arith.constant 0 : i32
    return %c0_i32, %c0_i32_0 : i32, i32
  }
  func.func @transform_3(%arg0: i32) -> (i32, i32) {
    %c0_i32 = arith.constant 0 : i32
    %c0_i32_0 = arith.constant 0 : i32
    %c0_i32_1 = arith.constant 0 : i32
    return %c0_i32, %c0_i32_0 : i32, i32
  }
  func.func @transform_4(%arg0: i32) -> (i32, i32) {
    %c0_i32 = arith.constant 0 : i32
    %c0_i32_0 = arith.constant 0 : i32
    %c0_i32_1 = arith.constant 0 : i32
    return %c0_i32, %c0_i32_0 : i32, i32
  }
  func.func @transform_5(%arg0: i32) -> (i32, i32) {
    %c0_i32 = arith.constant 0 : i32
    %c0_i32_0 = arith.constant 0 : i32
    %c0_i32_1 = arith.constant 0 : i32
    return %c0_i32, %c0_i32_0 : i32, i32
  }
  func.func @transform_6(%arg0: i32) -> (i32, i32) {
    %c0_i32 = arith.constant 0 : i32
    %c0_i32_0 = arith.constant 0 : i32
    %c0_i32_1 = arith.constant 0 : i32
    return %c0_i32, %c0_i32_0 : i32, i32
  }
  func.func @transform_7(%arg0: i32) -> (i32, i32) {
    %c0_i32 = arith.constant 0 : i32
    %c0_i32_0 = arith.constant 0 : i32
    return %arg0, %c0_i32 : i32, i32
  }
}

</mosaic_0001>

<bundles_post_ra>
// kernel: tpu_custom_call.1
= control target key start
LH: loop header
LB: loop body
LE: loop exit
PB: predicated region body
PF: predicated region fallthrough
CT: control target
= control target key end

     0   :  { %12 = vsyncpa [#allocation3], 0  ;;  %s551_s0 = inlined_call_operand.hbm [shape: f32[8,16], index: 0, kind: input, shape index: {}]   ;;  %s552_s1 = inlined_call_operand.hbm [shape: bf16[16,32], index: 1, kind: input, shape index: {}]   ;;  %s553_s2 = inlined_call_operand.vmem [shape: f32[1,32], index: 2, kind: input, shape index: {}]   ;;  %s554_s3 = inlined_call_operand.hbm [shape: bf16[32,32], index: 3, kind: input, shape index: {}]   ;;  %s555_s4 = inlined_call_operand.vmem [shape: f32[1,32], index: 4, kind: input, shape index: {}]   ;;  %s556_s5 = inlined_call_operand.vmem [shape: bf16[32,128], index: 5, kind: input, shape index: {}]   ;;  %s557_s6 = inlined_call_operand.vmem [shape: f32[1,128], index: 6, kind: input, shape index: {}]   ;;  %s558_s7 = inlined_call_operand.hbm [shape: f32[8,128], index: 7, kind: output, shape index: {}]  }
   0x1   :  { %13 = vsyncpa [#allocation6], 0 }
   0x2   :  { %14 = vsyncpa [#allocation4], 0  ;;  %s434_s24 = smov [#allocation5]   ;;  %s340_s28 = scalar_lea.hbm %s552_s1, 128 }
   0x3   :  { %s30_s25 = sshll.u32 %s434_s24, 4  ;;  %p341_p0 = scmp.ne.s32.totalorder %s552_s1, %s340_s28  ;;  %s31_s25 = int_to_ptr.vmem [resolvable:$true] %s30_s25 }
   0x4   :  { %p344_p1 = scmp.lt.u32.totalorder %s340_s28, %s552_s1 }
   0x6   :  { %p346_p2 = pnand %p344_p1, %p341_p0 }
   0x8   :  { %349 = shalt.err (!%p346_p2)
}
   0x9   :  { %s350_s10 = scalar_lea.vmem %s31_s25, 128  ;;  %p355_p4 = scmp.lt.s32.totalorder %s31_s25, %s31_s25 }
   0xa   :  { %p351_p3 = scmp.ne.s32.totalorder %s31_s25, %s350_s10  ;;  %p356_p5 = scmp.lt.s32.totalorder %s350_s10, %s350_s10 }
   0xc   :  { %p357_p6 = por %p356_p5, %p355_p4 }
   0xe   :  { %p358_p7 = pnand %p357_p6, %p351_p3 }
  0x10   :  { %361 = shalt.err (!%p358_p7)
}
  0x11   :  { %s435_s11 = smov 64   ;;  %s436_s12 = smov 4  }
  0x12   :  { %36 = dma.hbm_to_vmem [thread:$0]  %s552_s1, 128, %s31_s25, [#allocation6], %s435_s11, %s435_s11, %s436_s12  }
  0x13   :  { %s437_s15 = smov [#allocation2]   ;;  %s438_s17 = smov [#allocation7]  }
  0x14   :  { %s21_s16 = sshll.u32 %s437_s15, 4  ;;  %s44_s18 = sshll.u32 %s438_s17, 4  ;;  %s22_s16 = int_to_ptr.vmem [resolvable:$true] %s21_s16  ;;  %s45_s18 = int_to_ptr.vmem [resolvable:$true] %s44_s18 }
  0x15   :  { %s362_s21 = scalar_lea.hbm %s551_s0, 128 }
  0x16   :  { %p363_p8 = scmp.ne.s32.totalorder %s551_s0, %s362_s21  ;;  %p366_p9 = scmp.lt.u32.totalorder %s362_s21, %s551_s0 }
  0x18   :  { %p368_p10 = pnand %p366_p9, %p363_p8 }
  0x1a   :  { %371 = shalt.err (!%p368_p10)
}
  0x1b   :  { %s372_s1 = scalar_lea.vmem %s22_s16, 128  ;;  %p377_p12 = scmp.lt.s32.totalorder %s22_s16, %s22_s16 }
  0x1c   :  { %p373_p11 = scmp.ne.s32.totalorder %s22_s16, %s372_s1  ;;  %p378_p13 = scmp.lt.s32.totalorder %s372_s1, %s372_s1 }
  0x1e   :  { %p379_p0 = por %p378_p13, %p377_p12 }
  0x20   :  { %p380_p1 = pnand %p379_p0, %p373_p11 }
  0x22   :  { %383 = shalt.err (!%p380_p1)
}
  0x23   :  { %24 = dma.hbm_to_vmem [thread:$0]  %s551_s0, 128, %s22_s16, [#allocation3]  }
  0x24   :  { %s384_s30 = scalar_lea.hbm %s554_s3, 256 }
  0x25   :  { %p385_p2 = scmp.ne.s32.totalorder %s554_s3, %s384_s30  ;;  %p388_p3 = scmp.lt.u32.totalorder %s384_s30, %s554_s3 }
  0x27   :  { %p390_p4 = pnand %p388_p3, %p385_p2 }
  0x29   :  { %393 = shalt.err (!%p390_p4)
}
  0x2a   :  { %s394_s14 = scalar_lea.vmem %s45_s18, 256  ;;  %p399_p6 = scmp.lt.s32.totalorder %s45_s18, %s45_s18 }
  0x2b   :  { %p395_p5 = scmp.ne.s32.totalorder %s45_s18, %s394_s14  ;;  %p400_p7 = scmp.lt.s32.totalorder %s394_s14, %s394_s14 }
  0x2d   :  { %p401_p8 = por %p400_p7, %p399_p6 }
  0x2f   :  { %p402_p9 = pnand %p401_p8, %p395_p5 }
  0x31   :  { %405 = shalt.err (!%p402_p9)
}
  0x32   :  { %50 = dma.hbm_to_vmem [thread:$0]  %s554_s3, 256, %s45_s18, [#allocation6], %s435_s11, %s435_s11, %s436_s12  }
  0x33   :  { %428 = dma.done.wait [#allocation3], 128  }
  0x34   :  { %429 = vsyncadd [#allocation3], 4294967168 }
  0x35   :  { %430 = dma.done.wait [#allocation6], 384  }
  0x36   :  { %431 = vsyncadd [#allocation6], 4294966912  ;;  %v439_v0 = vmov 0.0   ;;  %vm440_vm0 = vmmov 0   ;;  %v333_v1 = vld [vmem:[#allocation5] sm:$0xff]   ;;  %v67_v2 = vld [vmem:[#allocation2] sm:$0xff] }
  0x37   :  { %303 = vmatprep.subr.bf16.mxu0 %v439_v0  ;;  %305 = vmatprep.mubr.msk.bf16.mxu0 %vm440_vm0, %v439_v0  ;;  %vm84_vm1 = vcmask 130048   ;;  %v68_v3 = vpack.c.bf16 %v67_v2, %v67_v2  ;;  %v334_v4 = vld [vmem:[#allocation7] sm:$0xff]   ;;  %v335_v5 = vld [vmem:[#allocation7 + $0x8] sm:$0xff]   ;;  %vm153_vm2 = vcmask 261120  }
  0x38   :  { %309 = vmatprep.subr.bf16.mxu1 %v439_v0  ;;  %313 = vmatprep.mubr.msk.bf16.mxu1 %vm440_vm0, %v439_v0  ;;  %v336_v6 = vld [vmem:[%s556_s5] sm:$0xff]   ;;  %v337_v15 = vld [vmem:[%s556_s5 + $0x8] sm:$0xff]   ;;  %s441_s5 = smov [#allocation8]  }
  0x39   :  { %304 = vmatpush3.bf16.msra.mxu0 %v333_v1  ;;  %310 = vmatpush3.bf16.msra.mxu1 %v334_v4  ;;  %v284_v7 = vld [vmem:[%s553_s2] ss:$0 sm:$0xff] }
  0x3a   :  { %317 = vmatprep.subr.bf16.mxu0 %v439_v0  ;;  %311 = vmatprep.subr.bf16.mxu1 %v439_v0  ;;  %v287_v16 = vld [vmem:[%s555_s4] ss:$0 sm:$0xff]  ;;  %s274_s4 = sshll.u32 %s441_s5, 4  ;;  %s275_s4 = int_to_ptr.vmem [resolvable:$true] %s274_s4 }
  0x3b   :  { %v291_v24 = vld [vmem:[%s557_s6] ss:$0 sm:$0xff]  ;;  %s406_s22 = scalar_lea.vmem %s275_s4, 128  ;;  %p411_p11 = scmp.lt.s32.totalorder %s275_s4, %s275_s4 }
  0x3c   :  { %306 = vmatmul.mubr.msk.bf16.vlgmr.msra.gmra.mrb[0].mxu0 %vm84_vm1, %v68_v3  ;;  %p407_p10 = scmp.ne.s32.totalorder %s275_s4, %s406_s22  ;;  %p412_p12 = scmp.lt.s32.totalorder %s406_s22, %s406_s22 }
  0x3d   :  { %321 = vmatprep.mubr.msk.bf16.mxu0 %vm440_vm0, %v439_v0  ;;  %312 = vmatpush3.bf16.msra.mxu1 %v335_v5 }
  0x3e   :  { %318 = vmatpush3.bf16.msra.mxu0 %v336_v6  ;;  %p413_p13 = por %p412_p12, %p411_p11 }
  0x3f   :  { %319 = vmatprep.subr.bf16.mxu0 %v439_v0 }
  0x40   :  { %p414_p0 = pnand %p413_p13, %p407_p10 }
  0x42   :  { %320 = vmatpush3.bf16.msra.mxu0 %v337_v15 }
 0x10f   :  { %v122_v8 = vpop.f32.mrb[0].mxu0 }
 0x110   :  { %v123_v9 = vadd.f32 %v284_v7, %v122_v8  ;;  %v307_v10 = vpop.f32.mrb[1].mxu0 }
 0x111   :  { %v125_v11 = vpop.f32.mrb[2].mxu0 }
 0x112   :  { %v128_v12 = vmax.f32 %v123_v9, 0.0  ;;  %v308_v13 = vpop.f32.mrb[3].mxu0 }
 0x114   :  { %v129_v14 = vpack.c.bf16 %v128_v12, %v128_v12 }
 0x116   :  { %314 = vmatmul.mubr.msk.bf16.vlgmr.msra.gmra.mrb[0].mxu1 %vm153_vm2, %v129_v14 }
 0x1e9   :  { %v191_v17 = vpop.f32.mrb[0].mxu1 }
 0x1ea   :  { %v192_v18 = vadd.f32 %v287_v16, %v191_v17  ;;  %v315_v19 = vpop.f32.mrb[1].mxu1 }
 0x1eb   :  { %v194_v20 = vpop.f32.mrb[2].mxu1 }
 0x1ec   :  { %v197_v21 = vmax.f32 %v192_v18, 0.0  ;;  %v316_v22 = vpop.f32.mrb[3].mxu1 }
 0x1ee   :  { %v198_v23 = vpack.c.bf16 %v197_v21, %v197_v21 }
 0x1f0   :  { %322 = vmatmul.mubr.msk.bf16.vlgmr.msra.gmra.mrb[4].mxu0 %vm153_vm2, %v198_v23 }
 0x2c3   :  { %v259_v25 = vpop.f32.mrb[4].mxu0 }
 0x2c4   :  { %v260_v26 = vadd.f32 %v291_v24, %v259_v25  ;;  %v323_v27 = vpop.f32.mrb[5].mxu0 }
 0x2c5   :  { %v262_v28 = vpop.f32.mrb[6].mxu0 }
 0x2c6   :  { %338 = vtanh.f32 %v260_v26  ;;  %v324_v29 = vpop.f32.mrb[7].mxu0 }
 0x2d0   :  { %v339_v30 = vpop.eup %338 }
 0x2d1   :  { %v266_v31 = vmul.f32 2.0, %v339_v30 }
 0x2d3   :  { %267 = vst [vmem:[#allocation8] sm:$0xff] %v266_v31 }
 0x2d4   :  { %417 = shalt.err (!%p414_p0)
}
 0x2d5   :  { %s418_s24 = scalar_lea.hbm %s558_s7, 128 }
 0x2d6   :  { %p419_p1 = scmp.ne.s32.totalorder %s558_s7, %s418_s24  ;;  %p422_p2 = scmp.lt.u32.totalorder %s418_s24, %s558_s7 }
 0x2d8   :  { %p424_p3 = pnand %p422_p2, %p419_p1 }
 0x2da   :  { %427 = shalt.err (!%p424_p3)
}
 0x2db   :  { %277 = dma.vmem_to_hbm [thread:$0]  %s275_s4, 128, %s558_s7, [#allocation4]  }
 0x2dc   :  { %432 = dma.done.wait [#allocation4], 128  }
 0x2dd   :  { %433 = vsyncadd [#allocation4], 4294967168 }
 0x2de   :  { %281 = vsyncpa [#allocation3], 1 }
 0x2df   :  { %282 = vsyncpa [#allocation6], 1 }
 0x2e0   :  { %283 = vsyncpa [#allocation4], 1 }

</bundles_post_ra>
